<compile_context>
chip_gen: v7x
topology: tpu7x:2x2x1
jax: 0.10.0
libtpu: 0.0.40
codegen_flags: <defaults>
</compile_context>

<pallas_src>
import functools
import math

import jax
import jax.numpy as jnp
from jax.experimental import pallas as pl
from jax.experimental.pallas import tpu as pltpu


def _map_sparsity_kernel(mask_ref, uv_ref, out_ref, *, num_channels, lane,
                         rows_per_block, inner_steps, mask_resident,
                         spatial_parallel):
    """One (parallel-block p, row-block s) grid step.

    mask_ref: (R, LANE) resident interleaved |mask|        [mask_resident]
              or (rt, LANE) per-step block                 [otherwise]
    uv_ref:   (bt, rt, LANE) uv tile in its natural interleaved layout
    out_ref:  (1, 8, 128) per-parallel-block partial (scalar splatted)
    """
    p = pl.program_id(0)
    s = pl.program_id(1)

    @pl.when(s == 0)
    def _init():
        out_ref[...] = jnp.zeros_like(out_ref)

    uv = uv_ref[...].astype(jnp.float32)                  # (bt, rt, LANE)
    sq = uv * uv

    # Per-pixel sum over the C interleaved channel lanes (roll tree).  After
    # the rolls, the channel-0 lane of every pixel holds sum_c uv_c^2; the
    # other lanes hold non-negative cross-pixel garbage that the interleaved
    # |mask| (zero on non-channel-0 lanes) kills after the batch sum.
    C = num_channels
    g = sq
    if C > 1:
        if C & (C - 1) == 0:                              # power of two: log2(C) rolls
            span = 1
            while span < C:
                g = g + pltpu.roll(g, shift=lane - span, axis=2)
                span *= 2
        else:                                             # generic: C-1 rolls of sq
            for k in range(1, C):
                g = g + pltpu.roll(sq, shift=lane - k, axis=2)

    # TODO(synk): compact g to stride-1 lanes here on v7x (C x fewer sqrts and
    # C x less mask/VALU/XLU work) once a lane-strided slice / shuffle with a
    # guaranteed Mosaic lowering is available.
    norms = jnp.sqrt(g)                                   # valid on channel-0 lanes
    bsum = jnp.sum(norms, axis=0)                         # (rt, LANE) batch-tile sum

    if mask_resident:
        # Slice the needed rows out of the VMEM-resident mask: no HBM refetch.
        rb = p * inner_steps + s if spatial_parallel else s
        start = pl.multiple_of(rb * rows_per_block, rows_per_block)
        m = mask_ref[pl.ds(start, rows_per_block), :]
    else:
        m = mask_ref[...]
    masked = bsum * m                                     # |m| * ||v||, garbage zeroed

    part = jnp.sum(masked, axis=-1, keepdims=True)        # (rt, 1)  lane reduce (XLU)
    part = jnp.sum(part, axis=0, keepdims=True)           # (1, 1)   sublane reduce
    out_ref[...] += jnp.broadcast_to(part, out_ref.shape)


def _choose_layout(H, W, C):
    """Flatten (H, W, C) to (rows, LANE): LANE is a multiple of lcm(128, C)
    that divides H*W*C (lane-dense loads; a pixel never straddles a row).
    Prefers a LANE whose row count is sublane-packable (rows % 8 == 0).
    Falls back to the natural (H, W*C) view when no such LANE exists."""
    total = H * W * C
    base = 128 * C // math.gcd(128, C)
    cands = [m for m in range(base, min(total, 1024) + 1, base) if total % m == 0]
    if not cands:
        return H, W * C
    packed = [m for m in cands if (total // m) % 8 == 0]
    lane = max(packed) if packed else min(cands)
    return total // lane, lane


def _pick_tiles(B, rows, lane, itemsize, budget_bytes, *, blocked_mask):
    """Largest (bt, rt) divisor tile whose single-copy footprint (uv tile plus
    the per-step mask tile when the mask is not VMEM-resident) fits the
    budget.  rt honours the dtype's sublane packing; bt is capped at B//2 so
    the parallel grid axis keeps >= 2 blocks for v7x megacore."""
    pack = {1: 32, 2: 16}.get(itemsize, 8)
    bt_cap = max(B // 2, 1) if B >= 2 else 1

    def tile_bytes(bt, rt):
        b = bt * rt * lane * itemsize                     # uv tile (single copy)
        if blocked_mask:
            b += rt * lane * 4                            # per-step f32 mask tile
        return b

    row_divs = [d for d in range(1, rows + 1) if rows % d == 0]
    packed_divs = [d for d in row_divs if d % pack == 0]
    rt_cands = packed_divs if packed_divs else row_divs
    bt_cands = [d for d in range(1, B + 1) if B % d == 0 and d <= bt_cap]

    best = None
    for rt in rt_cands:
        for bt in bt_cands:
            if tile_bytes(bt, rt) <= budget_bytes:
                key = (bt * rt, bt)        # biggest tile; prefer batch amortization
                if best is None or key > best[0]:
                    best = (key, bt, rt)
    if best is None:                       # nothing fits: smallest legal tile
        return 1, min(rt_cands)
    return best[1], best[2]


def map_sparsity_loss(weight_mask, uv_map, *,
                      block_budget_bytes=12 * 1024 * 1024,
                      mask_resident_bytes=4 * 1024 * 1024,
                      vmem_limit_bytes=48 * 1024 * 1024):
    """weight_mask: (H, W), uv_map: (B, H, W, C) -> scalar f32 loss."""
    B, H, W, C = uv_map.shape
    itemsize = jnp.dtype(uv_map.dtype).itemsize

    rows, lane = _choose_layout(H, W, C)
    # Free reshape of the contiguous array: no HBM transpose of uv.
    uv = uv_map.reshape(B, rows, lane)

    # |mask| on the channel-0 lane of every pixel, zeros elsewhere (tiny build).
    mask_abs = jnp.abs(weight_mask).astype(jnp.float32)
    if C > 1:
        mask_i = jnp.concatenate(
            [mask_abs[..., None], jnp.zeros((H, W, C - 1), jnp.float32)], axis=-1)
    else:
        mask_i = mask_abs[..., None]
    mask_i = mask_i.reshape(rows, lane)

    # weight_sum hoisted out of the kernel (raw signed sum, matching PyTorch).
    weight_sum = jnp.sum(weight_mask.astype(jnp.float32))

    # Keep the whole interleaved mask resident in VMEM (fetched once per core)
    # unless it is too big; only then fall back to per-step mask blocks.
    mask_resident = rows * lane * 4 <= mask_resident_bytes

    bt, rt = _pick_tiles(B, rows, lane, itemsize, block_budget_bytes,
                         blocked_mask=not mask_resident)
    nblocks = rows // rt

    if B >= 2:
        spatial_parallel = False
        np_, ns = B // bt, nblocks                        # np_ >= 2 since bt <= B//2
    else:
        # B == 1: split the row-block axis into 2 parallel super-chunks so the
        # "parallel" grid axis still feeds both v7x TensorCores.
        spatial_parallel = True
        bt = 1
        sp = 2 if (nblocks >= 2 and nblocks % 2 == 0) else 1
        np_, ns = sp, nblocks // sp

    if spatial_parallel:
        uv_spec = pl.BlockSpec((bt, rt, lane), lambda p, s: (0, p * ns + s, 0))
    else:
        uv_spec = pl.BlockSpec((bt, rt, lane), lambda p, s: (p, s, 0))

    if mask_resident:
        mask_spec = pl.BlockSpec((rows, lane), lambda p, s: (0, 0))
    elif spatial_parallel:
        mask_spec = pl.BlockSpec((rt, lane), lambda p, s: (p * ns + s, 0))
    else:
        mask_spec = pl.BlockSpec((rt, lane), lambda p, s: (s, 0))

    kernel = functools.partial(
        _map_sparsity_kernel, num_channels=C, lane=lane, rows_per_block=rt,
        inner_steps=ns, mask_resident=mask_resident,
        spatial_parallel=spatial_parallel)

    partials = pl.pallas_call(
        kernel,
        out_shape=jax.ShapeDtypeStruct((np_, 8, 128), jnp.float32),
        grid_spec=pltpu.PrefetchScalarGridSpec(
            num_scalar_prefetch=0,
            grid=(np_, ns),
            in_specs=[mask_spec, uv_spec],
            # Lane-dense (1, 8, 128) partial per parallel block: satisfies the
            # (8, 128) BlockSpec rule (old (1, 1) block was a portability risk).
            out_specs=pl.BlockSpec((1, 8, 128), lambda p, s: (p, 0, 0)),
        ),
        compiler_params=pltpu.CompilerParams(
            dimension_semantics=("parallel", "arbitrary"),   # v7x megacore
            vmem_limit_bytes=vmem_limit_bytes,
        ),
    )(mask_i, uv)

    # Same NaN behavior as the reference when weight_sum == 0.
    return jnp.sum(partials[:, 0, 0]) / (weight_sum * B)


def map_sparsity_loss_ref(weight_mask, uv_map):
    # Pure-JAX reference with the exact PyTorch semantics.
    wm = weight_mask[None, ..., None]
    ws = wm.sum()
    norms = jnp.sqrt(jnp.sum((wm * uv_map) ** 2, axis=-1))
    return (norms.sum(axis=(1, 2)) / ws).mean()


if __name__ == "__main__":
    key = jax.random.PRNGKey(0)
    k_mask, k_uv = jax.random.split(key)

    # Small deterministic inputs; H*W*C = 2048 flattens to (8, 256) rows x lanes.
    B, H, W, C = 2, 16, 32, 4
    weight_mask = (jax.random.uniform(k_mask, (H, W)) > 0.4).astype(jnp.float32)
    uv_map = jax.random.normal(k_uv, (B, H, W, C), dtype=jnp.float32)

    loss = jax.block_until_ready(map_sparsity_loss(weight_mask, uv_map))
    ref = map_sparsity_loss_ref(weight_mask, uv_map)
    assert jnp.allclose(loss, ref, atol=1e-5, rtol=1e-5), (loss, ref)
    print("KERNEL_OK")
</pallas_src>

<mosaic_0001>
module attributes {stable_mosaic.version = 11 : i64} {
  func.func @_map_sparsity_kernel(%arg0: i32, %arg1: i32, %arg2: memref<8x256xf32, #tpu.memory_space<vmem>>, %arg3: memref<1x8x256xf32, #tpu.memory_space<vmem>>, %arg4: memref<1x8x128xf32, #tpu.memory_space<vmem>>) attributes {dimension_semantics = [#tpu.dimension_semantics<parallel>, #tpu.dimension_semantics<arbitrary>], iteration_bounds = array<i64: 2, 1>, scalar_prefetch = 0 : i64, scratch_operands = 0 : i64, tpu.core_type = #tpu.core_type<tc>, window_params = [{pipeline_mode = #tpu.pipeline_mode<synchronous>, transform_indices = @transform_0, window_bounds = array<i64: 8, 256>}, {transform_indices = @transform_1, window_bounds = array<i64: 1, 8, 256>}, {transform_indices = @transform_2, window_bounds = array<i64: 1, 8, 128>}]} {
    %c0_i32 = arith.constant 0 : i32
    %0 = arith.cmpi eq, %arg1, %c0_i32 : i32
    %1 = arith.extui %0 : i1 to i32
    %c0_i32_0 = arith.constant 0 : i32
    %2 = arith.cmpi ne, %1, %c0_i32_0 : i32
    scf.if %2 {
      %cst_12 = arith.constant 0.000000e+00 : f32
      %25 = vector.broadcast %cst_12 : f32 to vector<1x8x128xf32>
      %c0_13 = arith.constant 0 : index
      %c0_14 = arith.constant 0 : index
      %c0_15 = arith.constant 0 : index
      %26 = vector.load %arg4[%c0_13, %c0_14, %c0_15] : memref<1x8x128xf32, #tpu.memory_space<vmem>>, vector<1x8x128xf32>
      tpu.vector_store %arg4[%c0_13, %c0_14, %c0_15], %25 {strides = array<i32>} : memref<1x8x128xf32, #tpu.memory_space<vmem>>, vector<1x8x128xf32>,
    } else {
    }
    %c0 = arith.constant 0 : index
    %c0_1 = arith.constant 0 : index
    %c0_2 = arith.constant 0 : index
    %3 = vector.load %arg3[%c0, %c0_1, %c0_2] : memref<1x8x256xf32, #tpu.memory_space<vmem>>, vector<1x8x256xf32>
    %4 = arith.mulf %3, %3 : vector<1x8x256xf32>
    %c255_i32 = arith.constant 255 : i32
    %5 = tpu.dynamic_rotate %4 by %c255_i32 dim 2 : vector<1x8x256xf32>, i32 -> vector<1x8x256xf32>
    %6 = arith.addf %4, %5 : vector<1x8x256xf32>
    %c254_i32 = arith.constant 254 : i32
    %7 = tpu.dynamic_rotate %6 by %c254_i32 dim 2 : vector<1x8x256xf32>, i32 -> vector<1x8x256xf32>
    %8 = arith.addf %6, %7 : vector<1x8x256xf32>
    %9 = math.sqrt %8 : vector<1x8x256xf32>
    %cst = arith.constant dense<0.000000e+00> : vector<8x256xf32>
    %10 = vector.multi_reduction <add>, %9, %cst [0] : vector<1x8x256xf32> to vector<8x256xf32>
    %c8_i32 = arith.constant 8 : i32
    %11 = arith.muli %arg1, %c8_i32 : i32
    %12 = tpu.assume_multiple %11, 8 : i32
    %13 = arith.index_cast %12 : i32 to index
    %c0_3 = arith.constant 0 : index
    %14 = vector.load %arg2[%13, %c0_3] : memref<8x256xf32, #tpu.memory_space<vmem>>, vector<8x256xf32>
    %15 = arith.mulf %10, %14 : vector<8x256xf32>
    %cst_4 = arith.constant dense<0.000000e+00> : vector<8xf32>
    %16 = vector.multi_reduction <add>, %15, %cst_4 [1] : vector<8x256xf32> to vector<8xf32>
    %17 = vector.shape_cast %16 : vector<8xf32> to vector<8x1xf32>
    %cst_5 = arith.constant dense<0.000000e+00> : vector<1xf32>
    %18 = vector.multi_reduction <add>, %17, %cst_5 [0] : vector<8x1xf32> to vector<1xf32>
    %19 = vector.shape_cast %18 : vector<1xf32> to vector<1x1xf32>
    %c0_6 = arith.constant 0 : index
    %c0_7 = arith.constant 0 : index
    %c0_8 = arith.constant 0 : index
    %20 = vector.load %arg4[%c0_6, %c0_7, %c0_8] : memref<1x8x128xf32, #tpu.memory_space<vmem>>, vector<1x8x128xf32>
    %21 = vector.shape_cast %19 : vector<1x1xf32> to vector<1x1x1xf32>
    %22 = vector.broadcast %21 : vector<1x1x1xf32> to vector<1x8x128xf32>
    %23 = arith.addf %20, %22 : vector<1x8x128xf32>
    %c0_9 = arith.constant 0 : index
    %c0_10 = arith.constant 0 : index
    %c0_11 = arith.constant 0 : index
    %24 = vector.load %arg4[%c0_9, %c0_10, %c0_11] : memref<1x8x128xf32, #tpu.memory_space<vmem>>, vector<1x8x128xf32>
    tpu.vector_store %arg4[%c0_9, %c0_10, %c0_11], %23 {strides = array<i32>} : memref<1x8x128xf32, #tpu.memory_space<vmem>>, vector<1x8x128xf32>,
    return
  }
  func.func @transform_0(%arg0: i32, %arg1: i32) -> (i32, i32) {
    %c0_i32 = arith.constant 0 : i32
    %c0_i32_0 = arith.constant 0 : i32
    %c0_i32_1 = arith.constant 0 : i32
    return %c0_i32, %c0_i32_0 : i32, i32
  }
  func.func @transform_1(%arg0: i32, %arg1: i32) -> (i32, i32, i32) {
    %c0_i32 = arith.constant 0 : i32
    %c0_i32_0 = arith.constant 0 : i32
    return %arg0, %arg1, %c0_i32 : i32, i32, i32
  }
  func.func @transform_2(%arg0: i32, %arg1: i32) -> (i32, i32, i32) {
    %c0_i32 = arith.constant 0 : i32
    %c0_i32_0 = arith.constant 0 : i32
    %c0_i32_1 = arith.constant 0 : i32
    return %arg0, %c0_i32, %c0_i32_0 : i32, i32, i32
  }
}

</mosaic_0001>

<bundles_post_ra>
// kernel: tpu_custom_call.1
= control target key start
LH: loop header
LB: loop body
LE: loop exit
PB: predicated region body
PF: predicated region fallthrough
CT: control target
= control target key end

     0   :  { %7 = vsyncpa [#allocation3], 0  ;;  %s845_s0 = inlined_call_operand.hbm [shape: f32[8,256], index: 0, kind: input, shape index: {}]   ;;  %s846_s1 = inlined_call_operand.hbm [shape: f32[2,8,256], index: 1, kind: input, shape index: {}]   ;;  %s847_s2 = inlined_call_operand.hbm [shape: f32[2,8,128], index: 2, kind: output, shape index: {}]  }
   0x1   :  { %8 = vsyncpa [#allocation6], 0 }
   0x2   :  { %10 = vsyncpa [#allocation6 + $0x1], 0 }
   0x3   :  { %11 = vsyncpa [#allocation4], 0 }
   0x4   :  { %13 = vsyncpa [#allocation4 + $0x1], 0  ;;  %s628_s9 = smov 0   ;;  %s630_s10 = smov 0  }
   0x5   :  { %s632_s11 = smov 0   ;;  %s634_s12 = smov 0  }
   0x6   :  { %s636_s13 = smov 0   ;;  %s638_s14 = smov 0  }
   0x7 LB: > { %s365_s15 = sadd.s32 4294967295, %s606_s14   ;;  %s366_s16 = sadd.s32 4294967294, %s606_s14   ;;  %s606_s14 = sphi %s638_s14, %s19_s14   ;;  %s602_s13 = sphi %s636_s13, %s872_s13   ;;  %s598_s12 = sphi %s634_s12, %s871_s12   ;;  %s594_s11 = sphi %s632_s11, %s870_s11   ;;  %s590_s10 = sphi %s630_s10, %s869_s10   ;;  %s586_s9 = sphi %s628_s9, %s868_s9  }
   0x8   : > { %p74_p0 = scmp.ne.s32.totalorder %s590_s10, %s586_s9  ;;  %p662_p1 = scmp.eq.s32.totalorder %s365_s15, 0 }
   0x9   : > { %p666_p2 = scmp.eq.s32.totalorder %s365_s15, 1  ;;  %p104_p3 = scmp.eq.s32.totalorder %s366_s16, 1 }
   0xa   : > { %s852_s17 = scalar_select %p662_p1, 1, 0 }
   0xb   : > { %s853_s18 = scalar_select %p666_p2, 1, 0 }
   0xc   : > { %p672_p4 = por %p662_p1, %p74_p0  ;;  %p367_p5 = scmp.ge.s32.totalorder %s606_s14, 1 }
   0xd   : > { %p677_p6 = por %p104_p3, %p74_p0  ;;  %p111_p7 = scmp.lt.s32.totalorder %s606_s14, 3 }
   0xe   : > { %s854_s19 = scalar_select %p672_p4, 1, 0 }
   0xf   : > { %s855_s20 = scalar_select %p677_p6, 1, 0 }
  0x10   : > { %p682_p8 = pnand %p367_p5, %p111_p7  ;;  %s608_s22 = smov [#allocation2]  }
  0x11   : > { %s124_s23 = sshll.u32 %s608_s22, 4  ;;  %s31_s25 = sadd.s32 1, %s602_s13  ;;  %s125_s23 = int_to_ptr.vmem [resolvable:$true] %s124_s23 }
  0x12   : > { %s856_s21 = scalar_select %p682_p8, 1, 0 }
  0x13   : > { %p390_p10 = pneg %p682_p8  ;;  %s61_s26 = sadd.s32 1, %s594_s11 }
  0x14   : > { %p697_p12 = scmp.ge.s32.totalorder %s31_s25, 2  ;;  %s462_s30 = scalar_lea.hbm %s845_s0, 256 }
  0x15   : > { %p691_p11 = pnand %p390_p10, %p662_p1  ;;  %p463_p13 = scmp.ne.s32.totalorder %s845_s0, %s462_s30 }
  0x16   : > { %s858_s27 = scalar_select %p697_p12, 1, 0 }
  0x17   : > { %p464_p0 = pneg %p691_p11  ;;  %p469_p7 = scmp.lt.u32.totalorder %s462_s30, %s845_s0 }
  0x19   : > { %p465_p3 = pnand %p464_p0, %p463_p13 }
  0x1b   : > { %p466_p5 = pneg %p465_p3 }
  0x1d   : > { %p471_p10 = pnand %p469_p7, %p466_p5 }
  0x1f   : > { %474 = shalt.err (!%p471_p10)
}
  0x20   : > { %s475_s7 = scalar_lea.vmem %s125_s23, 256  ;;  %p483_p1 = scmp.lt.s32.totalorder %s125_s23, %s125_s23 }
  0x21   : > { %p476_p9 = scmp.ne.s32.totalorder %s125_s23, %s475_s7  ;;  %p484_p8 = scmp.lt.s32.totalorder %s475_s7, %s475_s7 }
  0x23   : > { %p478_p6 = pnand %p476_p9, %p464_p0  ;;  %p485_p2 = por %p484_p8, %p483_p1 }
  0x25   : > { %p479_p4 = pneg %p478_p6 }
  0x27   : > { %p486_p12 = pnand %p485_p2, %p479_p4 }
  0x29   : > { %489 = shalt.err (!%p486_p12)
}
  0x2a   : > { %393 = dma.hbm_to_vmem [thread:$0]  (!%p691_p11), %s845_s0, 256, %s125_s23, [#allocation3]  }
  0x2b   : > { %p859_p1 = scmp.ne.s32.totalorder %s858_s27, 0  ;;  %p68_p2 = scmp.ne.s32.totalorder %s594_s11, %s590_s10 }
  0x2c   : > { %p69_p4 = scmp.eq.s32.totalorder %s606_s14, 0  ;;  %p403_p6 = scmp.lt.s32.totalorder %s606_s14, 2 }
  0x2d   : > { %s874_s25 = smov (%p859_p1, %s31_s25), 0  ;;  %p860_p12 = scmp.ne.s32.totalorder %s853_s18, 0 }
  0x2e   : > { %s56_s16 = ssub.s32 %s602_s13, %s874_s25  ;;  %p70_p9 = por %p69_p4, %p68_p2 }
  0x2f   : > { %p59_p8 = scmp.eq.s32.totalorder %s56_s16, 0  ;;  %p729_p13 = por %p860_p12, %p68_p2 }
  0x30   : > { %s135_s24 = sand.u32 1, %s594_s11   ;;  %s381_s27 = sshll.u32 %s602_s13, 8 }
  0x31   : > { %s737_s28 = scalar_select %p59_p8, %s594_s11, %s61_s26  }
  0x32   : > { %s370_s23 = sshll.u32 %s135_s24, 4  ;;  %s743_s3 = scalar_lea.hbm %s846_s1, %s381_s27 }
  0x33   : > { %s139_s18 = scalar_lea.vmem [#allocation5], %s370_s23  ;;  %p747_p11 = pnand %p403_p6, %p70_p9 }
  0x34   : > { %s149_s4 = sshll.u32 %s139_s18, 4  ;;  %s136_s26 = scalar_lea.sflag [#allocation6], %s135_s24  ;;  %s745_s4 = int_to_ptr.vmem [resolvable:$true] %s149_s4 }
  0x35   : > { %s490_s6 = scalar_lea.hbm %s743_s3, 256  ;;  %p492_p3 = pneg %p747_p11 }
  0x36   : > { %p491_p0 = scmp.ne.s32.totalorder %s743_s3, %s490_s6  ;;  %s495_s15 = scalar_lea.hbm %s846_s1, 512 }
  0x37   : > { %p496_p10 = scmp.lt.u32.totalorder %s743_s3, %s846_s1  ;;  %p497_p1 = scmp.lt.u32.totalorder %s495_s15, %s490_s6 }
  0x38   : > { %p493_p5 = pnand %p492_p3, %p491_p0  ;;  %p499_p4 = scmp.lt.u32.totalorder %s490_s6, %s743_s3 }
  0x39   : > { %p498_p2 = por %p497_p1, %p496_p10 }
  0x3a   : > { %p494_p7 = pneg %p493_p5 }
  0x3b   : > { %p500_p6 = por %p499_p4, %p498_p2 }
  0x3d   : > { %p501_p8 = pnand %p500_p6, %p494_p7 }
  0x3f   : > { %504 = shalt.err (!%p501_p8)
}
  0x40   : > { %s505_s24 = scalar_lea.vmem %s745_s4, 256  ;;  %s609_s27 = smov [#allocation5]  }
  0x41   : > { %p506_p9 = scmp.ne.s32.totalorder %s745_s4, %s505_s24  ;;  %s510_s29 = sshll.u32 %s609_s27, 4  ;;  %s511_s29 = int_to_ptr.vmem [resolvable:$false] %s510_s29 }
  0x42   : > { %s512_s30 = scalar_lea.vmem %s511_s29, 512  ;;  %p513_p5 = scmp.lt.s32.totalorder %s745_s4, %s511_s29 }
  0x43   : > { %p508_p12 = pnand %p506_p9, %p492_p3  ;;  %p514_p10 = scmp.lt.s32.totalorder %s512_s30, %s505_s24 }
  0x45   : > { %p509_p0 = pneg %p508_p12  ;;  %p515_p1 = por %p514_p10, %p513_p5 }
  0x47   : > { %p516_p2 = pnand %p515_p1, %p509_p0 }
  0x49   : > { %519 = shalt.err (!%p516_p2)
}
  0x4a   : > { %397 = dma.hbm_to_vmem [thread:$0]  (!%p747_p11), %s743_s3, 256, %s745_s4, %s136_s26  }
  0x4b   : > { %p863_p7 = scmp.ne.s32.totalorder %s856_s21, 0 }
  0x4c   : > { %p864_p3 = scmp.ne.s32.totalorder (!%p863_p7), %s852_s17, 0 }
  0x4d   : > { %158 = sbr.rel (%p863_p7) target bundleno = 524 (0x20c), region = 28 }
  0x54   : > { %573 = dma.done.wait (%p864_p3), [#allocation3], 256  }
  0x55   : > { %575 = vsyncadd (%p864_p3), [#allocation3], 4294967040  ;;  %s783_s18 = sand.u32 1, %s590_s10   ;;  %p865_p4 = scmp.ne.s32.totalorder %s854_s19, 0 }
  0x56   : > { %s375_s6 = sshll.u32 %s783_s18, 4  ;;  %s165_s5 = scalar_lea.sflag [#allocation6], %s783_s18 }
  0x57   : > { %s168_s7 = scalar_lea.vmem [#allocation5], %s375_s6 }
  0x58   : > { %577 = dma.done.wait (%p865_p4), %s165_s5, 256  }
  0x59   : > { %579 = vsyncadd (%p865_p4), %s165_s5, 4294967040  ;;  %v194_v0 = vld [vmem:[%s168_s7] sm:$0xff]  ;;  %v195_v1 = vld [vmem:[%s168_s7 + $0x8] sm:$0xff]  ;;  %s610_s21 = smov 127   ;;  %v202_v4 = vlaneseq  ;;  %s611_s17 = smov 126  }
  0x5a   : > { %v196_v2 = vmul.f32 %v194_v0, %v194_v0  ;;  %v197_v3 = vmul.f32 %v195_v1, %v195_v1  ;;  %v240_v23 = vld [vmem:[#allocation2] sm:$0xff]  ;;  %v241_v26 = vld [vmem:[#allocation2 + $0x8] sm:$0xff]  ;;  %s376_s19 = sshll.u32 %s783_s18, 3  ;;  %s378_s3 = sshll.u32 %s598_s12, 7 }
  0x5b   : > { %v203_v5 = vand.u32 127, %v202_v4  ;;  %s188_s4 = scalar_lea.vmem [#allocation7], %s376_s19  ;;  %s796_s16 = scalar_lea.hbm %s847_s2, %s378_s3 }
  0x5c   : > { %198 = vrot.lane.b32.xlu0 %v196_v2, %s610_s21  ;;  %s270_s26 = sshll.u32 %s188_s4, 4  ;;  %s257_s23 = scalar_lea.sflag [#allocation4], %s783_s18  ;;  %s798_s26 = int_to_ptr.vmem [resolvable:$true] %s270_s26 }
  0x5d   : > { %vm204_vm0 = vcmp.lt.s32.totalorder %v203_v5, 127  ;;  %vm213_vm1 = vcmp.lt.s32.totalorder %v203_v5, 126  ;;  %s520_s24 = scalar_lea.vmem %s798_s26, 128  ;;  %s612_s12 = smov [#allocation7]  }
  0x5e   : > { %p521_p11 = scmp.ne.s32.totalorder %s798_s26, %s520_s24  ;;  %s524_s27 = sshll.u32 %s612_s12, 4  ;;  %s525_s27 = int_to_ptr.vmem [resolvable:$false] %s524_s27 }
  0x5f   : > { %s526_s29 = scalar_lea.vmem %s525_s27, 256  ;;  %p527_p9 = scmp.lt.s32.totalorder %s798_s26, %s525_s27 }
  0x60   : > { %200 = vrot.lane.b32.xlu0 %v197_v3, %s610_s21  ;;  %p522_p6 = pnand %p521_p11, %p729_p13  ;;  %p528_p12 = scmp.lt.s32.totalorder %s526_s29, %s520_s24 }
  0x62   : > { %p523_p8 = pneg %p522_p6  ;;  %p529_p0 = por %p528_p12, %p527_p9 }
  0x64   : > { %p530_p5 = pnand %p529_p0, %p523_p8 }
  0xce   : > { %v199_v6 = vpop.permute.xlu0 %198 }
  0xd2   : > { %v201_v7 = vpop.permute.xlu0 %200 }
  0xd3   : > { %v205_v8 = vsel %vm204_vm0, %v199_v6, %v201_v7  ;;  %v206_v10 = vsel %vm204_vm0, %v201_v7, %v199_v6 }
  0xd4   : > { %v207_v9 = vadd.f32 %v205_v8, %v196_v2  ;;  %v208_v11 = vadd.f32 %v206_v10, %v197_v3 }
  0xd6   : > { %209 = vrot.lane.b32.xlu1 %v207_v9, %s611_s17 }
  0xda   : > { %211 = vrot.lane.b32.xlu1 %v208_v11, %s611_s17 }
 0x148   : > { %v210_v12 = vpop.permute.xlu1 %209 }
 0x14c   : > { %v212_v13 = vpop.permute.xlu1 %211 }
 0x14d   : > { %v214_v14 = vsel %vm213_vm1, %v210_v12, %v212_v13  ;;  %v215_v15 = vsel %vm213_vm1, %v212_v13, %v210_v12 }
 0x14e   : > { %v216_v16 = vadd.f32 %v214_v14, %v207_v9  ;;  %v217_v17 = vadd.f32 %v215_v15, %v208_v11 }
 0x150   : > { %458 = vrsqrt.f32 %v216_v16  ;;  %vm220_vm2 = vcmp.eq.f32.partialorder %v216_v16, inf  ;;  %v223_v21 = vand.u32 2147483648, %v216_v16  ;;  %vm222_vm3 = vcmp.eq.f32.partialorder %v216_v16, 0.0 }
 0x151   : > { %460 = vrsqrt.f32 %v217_v17  ;;  %vm227_vm4 = vcmp.eq.f32.partialorder %v217_v17, inf  ;;  %v230_v25 = vand.u32 2147483648, %v217_v17  ;;  %vm229_vm5 = vcmp.eq.f32.partialorder %v217_v17, 0.0 }
 0x15a   : > { %v459_v18 = vpop.eup %458 }
 0x15b   : > { %v461_v19 = vpop.eup %460  ;;  %v219_v20 = vmul.f32 %v459_v18, %v216_v16 }
 0x15c   : > { %v226_v22 = vmul.f32 %v461_v19, %v217_v17 }
 0x15d   : > { %v221_v24 = vsel %vm220_vm2, %v216_v16, %v219_v20 }
 0x15e   : > { %v224_v27 = vsel %vm222_vm3, %v223_v21, %v221_v24  ;;  %v228_v28 = vsel %vm227_vm4, %v217_v17, %v226_v22 }
 0x15f   : > { %v231_v29 = vsel %vm229_vm5, %v230_v25, %v228_v28  ;;  %v242_v30 = vmul.f32 %v240_v23, %v224_v27 }
 0x160   : > { %v243_v31 = vmul.f32 %v241_v26, %v231_v29 }
 0x162   : > { %v244_v32 = vadd.f32 %v243_v31, %v242_v30 }
 0x164   : > { %245 = vadd.xlane.f32.xlu0 %v244_v32 }
 0x1f1   : > { %v246_v33 = vpop.xlane.xlu0 %245 }
 0x1f2   : > { %v247_v34 = vrot.slane %v246_v33, 4 }
 0x1f4   : > { %v248_v35 = vadd.f32 %v247_v34, %v246_v33 }
 0x1f6   : > { %v249_v36 = vrot.slane %v248_v35, 2 }
 0x1f8   : > { %v250_v37 = vadd.f32 %v249_v36, %v248_v35 }
 0x1fa   : > { %v251_v38 = vrot.slane %v250_v37, 1 }
 0x1fc   : > { %v252_v39 = vadd.f32 %v251_v38, %v250_v37 }
 0x1fe   : > { %255 = vst [vmem:[%s188_s4] sm:$0xff] %v252_v39 }
 0x1ff   : > { %533 = shalt.err (!%p530_p5)
}
 0x200   : > { %s534_s30 = scalar_lea.hbm %s796_s16, 128  ;;  %s538_s5 = scalar_lea.hbm %s847_s2, 256 }
 0x201   : > { %p535_p10 = scmp.ne.s32.totalorder %s796_s16, %s534_s30  ;;  %p539_p7 = scmp.lt.u32.totalorder %s796_s16, %s847_s2 }
 0x202   : > { %p540_p3 = scmp.lt.u32.totalorder %s538_s5, %s534_s30  ;;  %p542_p11 = scmp.lt.u32.totalorder %s534_s30, %s796_s16 }
 0x203   : > { %p536_p1 = pnand %p535_p10, %p729_p13 }
 0x204   : > { %p541_p4 = por %p540_p3, %p539_p7 }
 0x205   : > { %p537_p2 = pneg %p536_p1 }
 0x206   : > { %p543_p6 = por %p542_p11, %p541_p4 }
 0x208   : > { %p544_p8 = pnand %p543_p6, %p537_p2 }
 0x20a   : > { %547 = shalt.err (!%p544_p8)
}
 0x20b   : > { %388 = dma.vmem_to_hbm [thread:$0]  (%p729_p13), %s798_s26, 128, %s796_s16, %s257_s23  }
 0x20c PF: > { %s282_s17 = sand.u32 1, %s586_s9   ;;  %p866_p9 = scmp.ne.s32.totalorder %s855_s20, 0 }
 0x20d   : > { %p867_p12 = scmp.ge.s32.totalorder %s606_s14, 2  ;;  %s283_s19 = scalar_lea.sflag [#allocation4], %s282_s17 }
 0x20f   : > { %p399_p0 = pnand %p867_p12, %p866_p9 }
 0x211   : > { %581 = dma.done.wait (!%p399_p0), %s283_s19, 128  }
 0x212   : > { %583 = vsyncadd (!%p399_p0), %s283_s19, 4294967168  ;;  %s19_s14 = sadd.s32 1, %s606_s14   ;;  %s868_s9 = smov %s590_s10 }
 0x213   : > { %p16_p5 = scmp.ge.s32.totalorder %s19_s14, 4   ;;  %s869_s10 = smov %s594_s11 }
 0x214   : > { %s870_s11 = smov %s737_s28  ;;  %s871_s12 = smov %s602_s13 }
 0x215   : > { %s872_s13 = smov %s874_s25  ;;  %18 = sbr.rel (!%p16_p5) target bundleno = 7 (0x7), region = 83 }
 0x21c   :  { %288 = vsyncpa [#allocation3], 1 }
 0x21d   :  { %290 = vsyncpa [#allocation3 + $0x1], 1 }
 0x21e   :  { %291 = vsyncpa [#allocation6], 1 }
 0x21f   :  { %293 = vsyncpa [#allocation6 + $0x1], 1 }
 0x220   :  { %294 = vsyncpa [#allocation4], 1 }
 0x221   :  { %296 = vsyncpa [#allocation4 + $0x1], 1 }

</bundles_post_ra>
